<compile_context>
chip_gen: v7x
topology: tpu7x:2x2x1
jax: 0.10.0
libtpu: 0.0.40
codegen_flags: <defaults>
</compile_context>

<pallas_src>
import jax
import jax.numpy as jnp
from jax.experimental import pallas as pl
from jax.experimental.pallas import tpu as pltpu


def _round_up(n, m):
    return ((n + m - 1) // m) * m


def _mlp_kernel(x_ref, w1_ref, b1_ref, w2_ref, b2_ref, w3_ref, b3_ref, out_ref):
    # Cast x to bf16 in-kernel (x is streamed from HBM as f32; the cast is VPU work
    # hidden under the DMA of the next tile).
    x = x_ref[...].astype(w1_ref.dtype)

    # Layer 1: (TB, 784) @ (784, 128) -> f32 accumulate, bias + ReLU in f32.
    h1 = jnp.dot(x, w1_ref[...], preferred_element_type=jnp.float32)
    h1 = jnp.maximum(h1 + b1_ref[...], 0.0)

    # Layer 2: (TB, 128) @ (128, 64); feed MXU in the weight dtype (bf16 path).
    h2 = jnp.dot(h1.astype(w2_ref.dtype), w2_ref[...],
                 preferred_element_type=jnp.float32)
    h2 = jnp.maximum(h2 + b2_ref[...], 0.0)

    # Layer 3: (TB, 64) @ (64, 128-padded). Padded columns carry bias -1e30 (f32).
    logits = jnp.dot(h2.astype(w3_ref.dtype), w3_ref[...],
                     preferred_element_type=jnp.float32)
    logits = logits + b3_ref[...]

    # Numerically stable log_softmax along the feature axis. Padded columns sit at
    # ~-1e30, so they never win the max and contribute exp(...) == 0 to the sum.
    m = jnp.max(logits, axis=-1, keepdims=True)
    shifted = logits - m
    lse = jnp.log(jnp.sum(jnp.exp(shifted), axis=-1, keepdims=True))
    out_ref[...] = (shifted - lse).astype(out_ref.dtype)


def _pick_tiling(B, tile_b):
    """Pick (tile_b, b_pad) so b_pad % tile_b == 0, tiles are 16-row aligned, and
    large batches are split into >= 2 grid steps (keeps both v7x TCs busy)."""
    n_steps = max(1, pl.cdiv(B, tile_b))
    if B > 512:
        n_steps = max(n_steps, 2)
    tile_b = _round_up(pl.cdiv(B, n_steps), 16)
    return tile_b, n_steps * tile_b


def modelo_forward(x, w1, b1, w2, b2, w3, b3, *, tile_b=1024,
                   out_dtype=jnp.bfloat16):
    B, K = x.shape
    out_dim = w3.shape[1]
    padded_out = 128  # lane-dense output slab

    # ---- pad the final layer to 128 output lanes (bias pad = large negative, f32) ----
    w3p = jnp.pad(w3, ((0, 0), (0, padded_out - out_dim)))
    b3p = jnp.pad(b3, ((0, 0), (0, padded_out - out_dim)), constant_values=-1e30)

    # ---- choose batch tile and pad the batch to a multiple of it ----
    tile_b, b_pad = _pick_tiling(B, tile_b)
    if b_pad != B:
        x = jnp.pad(x, ((0, b_pad - B), (0, 0)))

    # Weights in bf16 (tiny, VMEM-resident); biases stay f32 (incl. the -1e30 pad).
    w1c = w1.astype(jnp.bfloat16)
    w2c = w2.astype(jnp.bfloat16)
    w3c = w3p.astype(jnp.bfloat16)
    b1c = b1.astype(jnp.float32)
    b2c = b2.astype(jnp.float32)
    b3c = b3p.astype(jnp.float32)

    grid = (b_pad // tile_b,)

    resident = lambda arr: pl.BlockSpec(arr.shape, lambda i: (0, 0))

    cost = pl.CostEstimate(
        flops=2 * b_pad * (K * 128 + 128 * 64 + 64 * padded_out),
        transcendentals=b_pad * (padded_out + 1),
        bytes_accessed=(x.nbytes + w1c.nbytes + b1c.nbytes + w2c.nbytes
                        + b2c.nbytes + w3c.nbytes + b3c.nbytes
                        + b_pad * padded_out * jnp.dtype(out_dtype).itemsize),
    )

    out = pl.pallas_call(
        _mlp_kernel,
        out_shape=jax.ShapeDtypeStruct((b_pad, padded_out), out_dtype),
        grid=grid,
        in_specs=[
            pl.BlockSpec((tile_b, K), lambda i: (i, 0)),   # x: streamed per tile (f32)
            resident(w1c), resident(b1c),                  # weights/biases: VMEM-resident
            resident(w2c), resident(b2c),
            resident(w3c), resident(b3c),
        ],
        out_specs=pl.BlockSpec((tile_b, padded_out), lambda i: (i, 0)),
        compiler_params=pltpu.CompilerParams(
            dimension_semantics=("parallel",),
            # Explicit scoped-VMEM budget (tile_b=1024 footprint is ~12 MiB incl.
            # double buffering); safe on v7x's smaller 64 MiB physical VMEM too.
            vmem_limit_bytes=32 * 1024 * 1024,
        ),
        cost_estimate=cost,
    )(x, w1c, b1c, w2c, b2c, w3c, b3c)

    # Slice back to (B, 18). Under jit this slice fuses into the consumer.
    return out[:B, :out_dim]


def init_params(key):
    # Deterministic init mimicking PyTorch nn.Linear default:
    # uniform(-1/sqrt(fan_in), 1/sqrt(fan_in)); weights stored as (in, out).
    dims = [(28 * 28, 128), (128, 64), (64, 18)]
    params = []
    for fan_in, fan_out in dims:
        kw, kb, key = jax.random.split(key, 3)
        bound = 1.0 / jnp.sqrt(fan_in)
        w = jax.random.uniform(kw, (fan_in, fan_out), jnp.float32, -bound, bound)
        b = jax.random.uniform(kb, (1, fan_out), jnp.float32, -bound, bound)
        params += [w, b]
    return params


def reference_forward(x, w1, b1, w2, b2, w3, b3):
    h1 = jnp.maximum(x @ w1 + b1, 0.0)
    h2 = jnp.maximum(h1 @ w2 + b2, 0.0)
    logits = h2 @ w3 + b3
    return jax.nn.log_softmax(logits, axis=1)


if __name__ == "__main__":
    key = jax.random.PRNGKey(0)
    kx, kx2, kp = jax.random.split(key, 3)
    params = init_params(kp)

    # Small batch (single grid step, tile shrunk to 16 rows).
    B = 8
    x = jax.random.normal(kx, (B, 28 * 28), dtype=jnp.float32)
    out = jax.block_until_ready(modelo_forward(x, *params))
    ref = reference_forward(x, *params)
    assert out.shape == (B, 18)
    # bf16 matmul operands + bf16 output vs an f32 reference => loosened tolerance.
    assert jnp.allclose(out.astype(jnp.float32), ref, atol=5e-2, rtol=5e-2), \
        "mismatch vs reference (B=8)"

    # Larger batch exercising multiple pipelined grid steps (2 tiles of 512).
    B2 = 1024
    x2 = jax.random.normal(kx2, (B2, 28 * 28), dtype=jnp.float32)
    out2 = jax.block_until_ready(modelo_forward(x2, *params))
    ref2 = reference_forward(x2, *params)
    assert out2.shape == (B2, 18)
    assert jnp.allclose(out2.astype(jnp.float32), ref2, atol=5e-2, rtol=5e-2), \
        "mismatch vs reference (B=1024)"

    print("KERNEL_OK")
</pallas_src>

<mosaic_0001>
module attributes {stable_mosaic.version = 11 : i64} {
  func.func @_mlp_kernel(%arg0: i32, %arg1: memref<16x784xf32, #tpu.memory_space<vmem>>, %arg2: memref<784x128xbf16, #tpu.memory_space<vmem>>, %arg3: memref<1x128xf32, #tpu.memory_space<vmem>>, %arg4: memref<128x64xbf16, #tpu.memory_space<vmem>>, %arg5: memref<1x64xf32, #tpu.memory_space<vmem>>, %arg6: memref<64x128xbf16, #tpu.memory_space<vmem>>, %arg7: memref<1x128xf32, #tpu.memory_space<vmem>>, %arg8: memref<16x128xbf16, #tpu.memory_space<vmem>>) attributes {dimension_semantics = [#tpu.dimension_semantics<parallel>], iteration_bounds = array<i64: 1>, scalar_prefetch = 0 : i64, scratch_operands = 0 : i64, tpu.core_type = #tpu.core_type<tc>, window_params = [{transform_indices = @transform_0, window_bounds = array<i64: 16, 784>}, {pipeline_mode = #tpu.pipeline_mode<synchronous>, transform_indices = @transform_1, window_bounds = array<i64: 784, 128>}, {pipeline_mode = #tpu.pipeline_mode<synchronous>, transform_indices = @transform_2, window_bounds = array<i64: 1, 128>}, {pipeline_mode = #tpu.pipeline_mode<synchronous>, transform_indices = @transform_3, window_bounds = array<i64: 128, 64>}, {pipeline_mode = #tpu.pipeline_mode<synchronous>, transform_indices = @transform_4, window_bounds = array<i64: 1, 64>}, {pipeline_mode = #tpu.pipeline_mode<synchronous>, transform_indices = @transform_5, window_bounds = array<i64: 64, 128>}, {pipeline_mode = #tpu.pipeline_mode<synchronous>, transform_indices = @transform_6, window_bounds = array<i64: 1, 128>}, {transform_indices = @transform_7, window_bounds = array<i64: 16, 128>}]} {
    %c0 = arith.constant 0 : index
    %c0_0 = arith.constant 0 : index
    %0 = vector.load %arg1[%c0, %c0_0] : memref<16x784xf32, #tpu.memory_space<vmem>>, vector<16x784xf32>
    %1 = arith.truncf %0 : vector<16x784xf32> to vector<16x784xbf16>
    %c0_1 = arith.constant 0 : index
    %c0_2 = arith.constant 0 : index
    %2 = vector.load %arg2[%c0_1, %c0_2] : memref<784x128xbf16, #tpu.memory_space<vmem>>, vector<784x128xbf16>
    %cst = arith.constant dense<0.000000e+00> : vector<16x128xf32>
    %3 = tpu.matmul %1, %2, %cst {dimension_numbers = #tpu.dot_dimension_numbers<[1], [0], [0], [1], [0, 0, 1, 1], [], []>} : vector<16x784xbf16>, vector<784x128xbf16>, vector<16x128xf32> -> vector<16x128xf32>
    %c0_3 = arith.constant 0 : index
    %c0_4 = arith.constant 0 : index
    %4 = vector.load %arg3[%c0_3, %c0_4] : memref<1x128xf32, #tpu.memory_space<vmem>>, vector<1x128xf32>
    %5 = vector.broadcast %4 : vector<1x128xf32> to vector<16x128xf32>
    %6 = arith.addf %3, %5 : vector<16x128xf32>
    %cst_5 = arith.constant 0.000000e+00 : f32
    %7 = vector.broadcast %cst_5 : f32 to vector<16x128xf32>
    %8 = arith.maximumf %6, %7 : vector<16x128xf32>
    %9 = arith.truncf %8 : vector<16x128xf32> to vector<16x128xbf16>
    %c0_6 = arith.constant 0 : index
    %c0_7 = arith.constant 0 : index
    %10 = vector.load %arg4[%c0_6, %c0_7] : memref<128x64xbf16, #tpu.memory_space<vmem>>, vector<128x64xbf16>
    %cst_8 = arith.constant dense<0.000000e+00> : vector<16x64xf32>
    %11 = tpu.matmul %9, %10, %cst_8 {dimension_numbers = #tpu.dot_dimension_numbers<[1], [0], [0], [1], [0, 0, 1, 1], [], []>} : vector<16x128xbf16>, vector<128x64xbf16>, vector<16x64xf32> -> vector<16x64xf32>
    %c0_9 = arith.constant 0 : index
    %c0_10 = arith.constant 0 : index
    %12 = vector.load %arg5[%c0_9, %c0_10] : memref<1x64xf32, #tpu.memory_space<vmem>>, vector<1x64xf32>
    %13 = vector.broadcast %12 : vector<1x64xf32> to vector<16x64xf32>
    %14 = arith.addf %11, %13 : vector<16x64xf32>
    %cst_11 = arith.constant 0.000000e+00 : f32
    %15 = vector.broadcast %cst_11 : f32 to vector<16x64xf32>
    %16 = arith.maximumf %14, %15 : vector<16x64xf32>
    %17 = arith.truncf %16 : vector<16x64xf32> to vector<16x64xbf16>
    %c0_12 = arith.constant 0 : index
    %c0_13 = arith.constant 0 : index
    %18 = vector.load %arg6[%c0_12, %c0_13] : memref<64x128xbf16, #tpu.memory_space<vmem>>, vector<64x128xbf16>
    %cst_14 = arith.constant dense<0.000000e+00> : vector<16x128xf32>
    %19 = tpu.matmul %17, %18, %cst_14 {dimension_numbers = #tpu.dot_dimension_numbers<[1], [0], [0], [1], [0, 0, 1, 1], [], []>} : vector<16x64xbf16>, vector<64x128xbf16>, vector<16x128xf32> -> vector<16x128xf32>
    %c0_15 = arith.constant 0 : index
    %c0_16 = arith.constant 0 : index
    %20 = vector.load %arg7[%c0_15, %c0_16] : memref<1x128xf32, #tpu.memory_space<vmem>>, vector<1x128xf32>
    %21 = vector.broadcast %20 : vector<1x128xf32> to vector<16x128xf32>
    %22 = arith.addf %19, %21 : vector<16x128xf32>
    %cst_17 = arith.constant dense<0xFF800000> : vector<16xf32>
    %23 = vector.multi_reduction <maximumf>, %22, %cst_17 [1] : vector<16x128xf32> to vector<16xf32>
    %24 = vector.shape_cast %23 : vector<16xf32> to vector<16x1xf32>
    %25 = vector.broadcast %24 : vector<16x1xf32> to vector<16x128xf32>
    %26 = arith.subf %22, %25 : vector<16x128xf32>
    %27 = math.exp %26 : vector<16x128xf32>
    %cst_18 = arith.constant dense<0.000000e+00> : vector<16xf32>
    %28 = vector.multi_reduction <add>, %27, %cst_18 [1] : vector<16x128xf32> to vector<16xf32>
    %29 = vector.shape_cast %28 : vector<16xf32> to vector<16x1xf32>
    %30 = math.log %29 : vector<16x1xf32>
    %31 = vector.broadcast %30 : vector<16x1xf32> to vector<16x128xf32>
    %32 = arith.subf %26, %31 : vector<16x128xf32>
    %33 = arith.truncf %32 : vector<16x128xf32> to vector<16x128xbf16>
    %c0_19 = arith.constant 0 : index
    %c0_20 = arith.constant 0 : index
    %34 = vector.load %arg8[%c0_19, %c0_20] : memref<16x128xbf16, #tpu.memory_space<vmem>>, vector<16x128xbf16>
    tpu.vector_store %arg8[%c0_19, %c0_20], %33 {strides = array<i32>} : memref<16x128xbf16, #tpu.memory_space<vmem>>, vector<16x128xbf16>,
    return
  }
  func.func @transform_0(%arg0: i32) -> (i32, i32) {
    %c0_i32 = arith.constant 0 : i32
    %c0_i32_0 = arith.constant 0 : i32
    return %arg0, %c0_i32 : i32, i32
  }
  func.func @transform_1(%arg0: i32) -> (i32, i32) {
    %c0_i32 = arith.constant 0 : i32
    %c0_i32_0 = arith.constant 0 : i32
    %c0_i32_1 = arith.constant 0 : i32
    return %c0_i32, %c0_i32_0 : i32, i32
  }
  func.func @transform_2(%arg0: i32) -> (i32, i32) {
    %c0_i32 = arith.constant 0 : i32
    %c0_i32_0 = arith.constant 0 : i32
    %c0_i32_1 = arith.constant 0 : i32
    return %c0_i32, %c0_i32_0 : i32, i32
  }
  func.func @transform_3(%arg0: i32) -> (i32, i32) {
    %c0_i32 = arith.constant 0 : i32
    %c0_i32_0 = arith.constant 0 : i32
    %c0_i32_1 = arith.constant 0 : i32
    return %c0_i32, %c0_i32_0 : i32, i32
  }
  func.func @transform_4(%arg0: i32) -> (i32, i32) {
    %c0_i32 = arith.constant 0 : i32
    %c0_i32_0 = arith.constant 0 : i32
    %c0_i32_1 = arith.constant 0 : i32
    return %c0_i32, %c0_i32_0 : i32, i32
  }
  func.func @transform_5(%arg0: i32) -> (i32, i32) {
    %c0_i32 = arith.constant 0 : i32
    %c0_i32_0 = arith.constant 0 : i32
    %c0_i32_1 = arith.constant 0 : i32
    return %c0_i32, %c0_i32_0 : i32, i32
  }
  func.func @transform_6(%arg0: i32) -> (i32, i32) {
    %c0_i32 = arith.constant 0 : i32
    %c0_i32_0 = arith.constant 0 : i32
    %c0_i32_1 = arith.constant 0 : i32
    return %c0_i32, %c0_i32_0 : i32, i32
  }
  func.func @transform_7(%arg0: i32) -> (i32, i32) {
    %c0_i32 = arith.constant 0 : i32
    %c0_i32_0 = arith.constant 0 : i32
    return %arg0, %c0_i32 : i32, i32
  }
}

</mosaic_0001>

<bundles_post_ra>
// kernel: tpu_custom_call.1
= control target key start
LH: loop header
LB: loop body
LE: loop exit
PB: predicated region body
PF: predicated region fallthrough
CT: control target
= control target key end

     0   :  { %12 = vsyncpa [#allocation3], 0  ;;  %s1394_s0 = inlined_call_operand.hbm [shape: f32[16,784], index: 0, kind: input, shape index: {}]   ;;  %s1395_s1 = inlined_call_operand.hbm [shape: bf16[784,128], index: 1, kind: input, shape index: {}]   ;;  %s1396_s2 = inlined_call_operand.vmem [shape: f32[1,128], index: 2, kind: input, shape index: {}]   ;;  %s1397_s3 = inlined_call_operand.vmem [shape: bf16[128,64], index: 3, kind: input, shape index: {}]   ;;  %s1398_s4 = inlined_call_operand.vmem [shape: f32[1,64], index: 4, kind: input, shape index: {}]   ;;  %s1399_s5 = inlined_call_operand.vmem [shape: bf16[64,128], index: 5, kind: input, shape index: {}]   ;;  %s1400_s6 = inlined_call_operand.vmem [shape: f32[1,128], index: 6, kind: input, shape index: {}]   ;;  %s1401_s7 = inlined_call_operand.hbm [shape: bf16[16,128], index: 7, kind: output, shape index: {}]  }
   0x1   :  { %13 = vsyncpa [#allocation6], 0 }
   0x2   :  { %14 = vsyncpa [#allocation4], 0  ;;  %s1239_s24 = smov [#allocation2]   ;;  %s1167_s28 = scalar_lea.hbm %s1394_s0, 1792 }
   0x3   :  { %s20_s25 = sshll.u32 %s1239_s24, 4  ;;  %p1168_p0 = scmp.ne.s32.totalorder %s1394_s0, %s1167_s28  ;;  %s21_s25 = int_to_ptr.vmem [resolvable:$true] %s20_s25 }
   0x4   :  { %p1171_p1 = scmp.lt.u32.totalorder %s1167_s28, %s1394_s0 }
   0x6   :  { %p1173_p2 = pnand %p1171_p1, %p1168_p0 }
   0x8   :  { %1176 = shalt.err (!%p1173_p2)
}
   0x9   :  { %s1177_s10 = scalar_lea.vmem %s21_s25, 1792  ;;  %p1182_p4 = scmp.lt.s32.totalorder %s21_s25, %s21_s25 }
   0xa   :  { %p1178_p3 = scmp.ne.s32.totalorder %s21_s25, %s1177_s10  ;;  %p1183_p5 = scmp.lt.s32.totalorder %s1177_s10, %s1177_s10 }
   0xc   :  { %p1184_p6 = por %p1183_p5, %p1182_p4 }
   0xe   :  { %p1185_p7 = pnand %p1184_p6, %p1178_p3 }
  0x10   :  { %1188 = shalt.err (!%p1185_p7)
}
  0x11   :  { %s1240_s11 = smov 896   ;;  %s1241_s12 = smov 56  }
  0x12   :  { %26 = dma.hbm_to_vmem [thread:$0]  %s1394_s0, 1792, %s21_s25, [#allocation3], %s1240_s11, %s1240_s11, %s1241_s12  }
  0x13   :  { %s1242_s15 = smov [#allocation5]   ;;  %s1189_s19 = scalar_lea.hbm %s1395_s1, 6272 }
  0x14   :  { %s32_s16 = sshll.u32 %s1242_s15, 4  ;;  %p1190_p8 = scmp.ne.s32.totalorder %s1395_s1, %s1189_s19  ;;  %s33_s16 = int_to_ptr.vmem [resolvable:$true] %s32_s16 }
  0x15   :  { %p1193_p9 = scmp.lt.u32.totalorder %s1189_s19, %s1395_s1 }
  0x17   :  { %p1195_p10 = pnand %p1193_p9, %p1190_p8 }
  0x19   :  { %1198 = shalt.err (!%p1195_p10)
}
  0x1a   :  { %s1199_s24 = scalar_lea.vmem %s33_s16, 6272  ;;  %p1204_p12 = scmp.lt.s32.totalorder %s33_s16, %s33_s16 }
  0x1b   :  { %p1200_p11 = scmp.ne.s32.totalorder %s33_s16, %s1199_s24  ;;  %p1205_p13 = scmp.lt.s32.totalorder %s1199_s24, %s1199_s24 }
  0x1d   :  { %p1206_p0 = por %p1205_p13, %p1204_p12 }
  0x1f   :  { %p1207_p1 = pnand %p1206_p0, %p1200_p11 }
  0x21   :  { %1210 = shalt.err (!%p1207_p1)
}
  0x22   :  { %s1243_s0 = smov 64   ;;  %s1244_s25 = smov 4  }
  0x23   :  { %38 = dma.hbm_to_vmem [thread:$0]  %s1395_s1, 6272, %s33_s16, [#allocation6], %s1243_s0, %s1243_s0, %s1244_s25  }
  0x24   :  { %1233 = dma.done.wait [#allocation3], 1792  }
  0x25   :  { %1234 = vsyncadd [#allocation3], 4294965504 }
  0x26   :  { %1235 = dma.done.wait [#allocation6], 6272  }
  0x27   :  { %1236 = vsyncadd [#allocation6], 4294961024  ;;  %v1098_v0 = vld [vmem:[#allocation5 + $0x40] sm:$0xff]   ;;  %v1102_v4 = vld [vmem:[#allocation5 + $0x48] sm:$0xff]   ;;  %v1245_v43 = vmov 0.0   ;;  %vm1246_vm0 = vmmov 0  }
  0x28   :  { %v1099_v1 = vld [vmem:[#allocation5] sm:$0xff]   ;;  %969 = vmatprep.subr.bf16.mxu0 %v1098_v0  ;;  %v1103_v5 = vld [vmem:[#allocation5 + $0x8] sm:$0xff]   ;;  %v1106_v8 = vld [vmem:[#allocation5 + $0x50] sm:$0xff]   ;;  %vm476_vm1 = vcmask 130048   ;;  %vm801_vm2 = vcmask 523264  }
  0x29   :  { %v1100_v2 = vld [vmem:[#allocation5 + $0xc0] sm:$0xff]   ;;  %970 = vmatpush3.bf16.msra.mxu0 %v1099_v1  ;;  %v1104_v6 = vld [vmem:[#allocation5 + $0xc8] sm:$0xff]   ;;  %v1107_v9 = vld [vmem:[#allocation5 + $0x10] sm:$0xff]  }
  0x2a   :  { %v1101_v3 = vld [vmem:[#allocation5 + $0x80] sm:$0xff]   ;;  %991 = vmatprep.subr.bf16.mxu1 %v1100_v2  ;;  %971 = vmatprep.subr.bf16.mxu0 %v1102_v4  ;;  %v1105_v7 = vld [vmem:[#allocation5 + $0x88] sm:$0xff]   ;;  %v1108_v10 = vld [vmem:[#allocation5 + $0xd0] sm:$0xff]  }
  0x2b   :  { %992 = vmatpush3.bf16.msra.mxu1 %v1101_v3  ;;  %v1109_v11 = vld [vmem:[#allocation5 + $0x90] sm:$0xff]   ;;  %v1110_v12 = vld [vmem:[#allocation5 + $0x58] sm:$0xff]   ;;  %v1114_v16 = vld [vmem:[#allocation5 + $0x60] sm:$0xff]  }
  0x2c   :  { %993 = vmatprep.subr.bf16.mxu1 %v1104_v6  ;;  %v1111_v13 = vld [vmem:[#allocation5 + $0x18] sm:$0xff]   ;;  %v1115_v17 = vld [vmem:[#allocation5 + $0x20] sm:$0xff]   ;;  %v1118_v20 = vld [vmem:[#allocation5 + $0x68] sm:$0xff]  }
  0x2d   :  { %972 = vmatpush3.bf16.msra.mxu0 %v1103_v5  ;;  %v1112_v14 = vld [vmem:[#allocation5 + $0xd8] sm:$0xff]   ;;  %v1116_v18 = vld [vmem:[#allocation5 + $0xe0] sm:$0xff]   ;;  %v1119_v21 = vld [vmem:[#allocation5 + $0x28] sm:$0xff]  }
  0x2e   :  { %973 = vmatprep.subr.bf16.mxu0 %v1106_v8  ;;  %v1113_v15 = vld [vmem:[#allocation5 + $0x98] sm:$0xff]   ;;  %v1117_v19 = vld [vmem:[#allocation5 + $0xa0] sm:$0xff]   ;;  %v1120_v22 = vld [vmem:[#allocation5 + $0xe8] sm:$0xff]  }
  0x2f   :  { %994 = vmatpush3.bf16.msra.mxu1 %v1105_v7  ;;  %v1121_v23 = vld [vmem:[#allocation5 + $0xa8] sm:$0xff]   ;;  %v1122_v24 = vld [vmem:[#allocation5 + $0x70] sm:$0xff]   ;;  %v1126_v28 = vld [vmem:[#allocation5 + $0x78] sm:$0xff]  }
  0x30   :  { %995 = vmatprep.subr.bf16.mxu1 %v1108_v10  ;;  %v1123_v25 = vld [vmem:[#allocation5 + $0x30] sm:$0xff]   ;;  %v1127_v29 = vld [vmem:[#allocation5 + $0x38] sm:$0xff]   ;;  %v63_v36 = vld [vmem:[#allocation2 + $0x38] sm:$0xff] }
  0x31   :  { %974 = vmatpush3.bf16.msra.mxu0 %v1107_v9  ;;  %v1124_v26 = vld [vmem:[#allocation5 + $0xf0] sm:$0xff]   ;;  %v1128_v30 = vld [vmem:[#allocation5 + $0xf8] sm:$0xff]   ;;  %v1130_v38 = vld [vmem:[#allocation5 + $0x140] sm:$0xff]  }
  0x32   :  { %975 = vmatprep.subr.bf16.mxu0 %v1110_v12  ;;  %v1125_v27 = vld [vmem:[#allocation5 + $0xb0] sm:$0xff]   ;;  %v57_v31 = vld [vmem:[#allocation2 + $0x8] sm:$0xff]  ;;  %v59_v39 = vld [vmem:[#allocation2 + $0x18] sm:$0xff] }
  0x33   :  { %996 = vmatpush3.bf16.msra.mxu1 %v1109_v11  ;;  %v64_v32 = vld [vmem:[#allocation2 + $0x40] sm:$0xff]  ;;  %v1129_v34 = vld [vmem:[#allocation5 + $0xb8] sm:$0xff]   ;;  %v66_v40 = vld [vmem:[#allocation2 + $0x50] sm:$0xff] }
  0x34   :  { %997 = vmatprep.subr.bf16.mxu1 %v1112_v14  ;;  %v71_v33 = vpack.c.bf16 %v64_v32, %v57_v31  ;;  %v56_v35 = vld [vmem:[#allocation2] sm:$0xff]  ;;  %v73_v41 = vpack.c.bf16 %v66_v40, %v59_v39  ;;  %v1131_v42 = vld [vmem:[#allocation5 + $0x100] sm:$0xff]   ;;  %v65_v45 = vld [vmem:[#allocation2 + $0x48] sm:$0xff] }
  0x35   :  { %976 = vmatpush3.bf16.msra.mxu0 %v1111_v13  ;;  %v70_v37 = vpack.c.bf16 %v63_v36, %v56_v35  ;;  %v58_v44 = vld [vmem:[#allocation2 + $0x10] sm:$0xff]  ;;  %v1132_v47 = vld [vmem:[#allocation5 + $0x148] sm:$0xff]   ;;  %v1134_v49 = vld [vmem:[#allocation5 + $0x150] sm:$0xff]  }
  0x36   :  { %977 = vmatprep.subr.bf16.mxu0 %v1114_v16  ;;  %512 = vmatprep.mubr.bf16.mxu0 %v71_v33  ;;  %v72_v46 = vpack.c.bf16 %v65_v45, %v58_v44  ;;  %v1133_v48 = vld [vmem:[#allocation5 + $0x108] sm:$0xff]   ;;  %v1135_v50 = vld [vmem:[#allocation5 + $0x110] sm:$0xff]   ;;  %v1136_v51 = vld [vmem:[#allocation5 + $0x158] sm:$0xff]  }
  0x37   :  { %998 = vmatpush3.bf16.msra.mxu1 %v1113_v15  ;;  %553 = vmatprep.mubr.bf16.mxu1 %v73_v41  ;;  %v1137_v52 = vld [vmem:[#allocation5 + $0x118] sm:$0xff]   ;;  %v1138_v53 = vld [vmem:[#allocation5 + $0x160] sm:$0xff]   ;;  %v1140_v55 = vld [vmem:[#allocation5 + $0x168] sm:$0xff]  }
  0x38   :  { %999 = vmatprep.subr.bf16.mxu1 %v1116_v18  ;;  %v1139_v54 = vld [vmem:[#allocation5 + $0x120] sm:$0xff]   ;;  %v61_v57 = vld [vmem:[#allocation2 + $0x28] sm:$0xff]  ;;  %v1141_v58 = vld [vmem:[#allocation5 + $0x128] sm:$0xff]  }
  0x39   :  { %978 = vmatpush3.bf16.msra.mxu0 %v1115_v17  ;;  %v1146_v56 = vld [vmem:[#allocation5 + $0x180] sm:$0xff]   ;;  %v1142_v59 = vld [vmem:[#allocation5 + $0x170] sm:$0xff]   ;;  %v69_v63 = vld [vmem:[#allocation2 + $0x68] sm:$0xff] }
  0x3a   :  { %979 = vmatprep.subr.bf16.mxu0 %v1118_v20  ;;  %v68_v60 = vld [vmem:[#allocation2 + $0x60] sm:$0xff]  ;;  %v62_v62 = vld [vmem:[#allocation2 + $0x30] sm:$0xff]  ;;  %v1144_v2 = vld [vmem:[#allocation5 + $0x178] sm:$0xff]  }
  0x3b   :  { %1000 = vmatpush3.bf16.msra.mxu1 %v1117_v19  ;;  %v75_v61 = vpack.c.bf16 %v68_v60, %v61_v57  ;;  %v76_v0 = vpack.c.bf16 %v69_v63, %v62_v62  ;;  %v1143_v1 = vld [vmem:[#allocation5 + $0x130] sm:$0xff]   ;;  %v1145_v3 = vld [vmem:[#allocation5 + $0x138] sm:$0xff]   ;;  %v67_v5 = vld [vmem:[#allocation2 + $0x58] sm:$0xff] }
  0x3c   :  { %1001 = vmatprep.subr.bf16.mxu1 %v1120_v22  ;;  %v60_v4 = vld [vmem:[#allocation2 + $0x20] sm:$0xff]  ;;  %v1148_v8 = vld [vmem:[%s1397_s3 + $0x8] sm:$0xff]   ;;  %v1149_v9 = vld [vmem:[%s1397_s3 + $0x10] sm:$0xff]  }
  0x3d   :  { %980 = vmatpush3.bf16.msra.mxu0 %v1119_v21  ;;  %v74_v6 = vpack.c.bf16 %v67_v5, %v60_v4  ;;  %v1147_v7 = vld [vmem:[%s1397_s3] sm:$0xff]   ;;  %v1150_v10 = vld [vmem:[%s1397_s3 + $0x18] sm:$0xff]   ;;  %v1152_v12 = vld [vmem:[%s1397_s3 + $0x28] sm:$0xff]  }
  0x3e   :  { %981 = vmatprep.subr.bf16.mxu0 %v1122_v24  ;;  %v1151_v11 = vld [vmem:[%s1397_s3 + $0x20] sm:$0xff]   ;;  %v1153_v13 = vld [vmem:[%s1397_s3 + $0x30] sm:$0xff]   ;;  %v1154_v14 = vld [vmem:[%s1397_s3 + $0x38] sm:$0xff]  }
  0x3f   :  { %1002 = vmatpush3.bf16.msra.mxu1 %v1121_v23  ;;  %v1155_v15 = vld [vmem:[%s1399_s5] sm:$0xff]   ;;  %v1156_v16 = vld [vmem:[%s1399_s5 + $0x8] sm:$0xff]  }
  0x40   :  { %1003 = vmatprep.subr.bf16.mxu1 %v1124_v26  ;;  %v894_v18 = vld [vmem:[%s1396_s2] ss:$0 sm:$0xff] }
  0x41   :  { %982 = vmatpush3.bf16.msra.mxu0 %v1123_v25 }
  0x42   :  { %983 = vmatprep.subr.bf16.mxu0 %v1126_v28 }
  0x43   :  { %1004 = vmatpush3.bf16.msra.mxu1 %v1125_v27 }
  0x44   :  { %1005 = vmatprep.subr.bf16.mxu1 %v1128_v30 }
  0x45   :  { %984 = vmatpush3.bf16.msra.mxu0 %v1127_v29 }
  0x46   :  { %1013 = vmatprep.subr.bf16.mxu0 %v1130_v38 }
  0x47   :  { %1006 = vmatpush3.bf16.msra.mxu1 %v1129_v34 }
  0x48   :  { %1051 = vmatprep.subr.bf16.mxu1 %v1245_v43  ;;  %513 = vmatmul.mubr.bf16.vlgmr.msra.gmra.mrb[0].mxu0 %v70_v37 }
  0x49   :  { %1014 = vmatpush3.bf16.msra.mxu0 %v1131_v42  ;;  %594 = vmatprep.mubr.bf16.mxu0 %v75_v61 }
  0x4a   :  { %554 = vmatmul.mubr.bf16.vlgmr.msra.gmra.mrb[0].mxu1 %v72_v46  ;;  %1015 = vmatprep.subr.bf16.mxu0 %v1132_v47 }
  0x4b   :  { %1053 = vmatprep.mubr.msk.bf16.mxu1 %vm1246_vm0, %v1245_v43  ;;  %1052 = vmatpush3.bf16.msra.mxu1 %v1146_v56 }
  0x4c   :  { %1057 = vmatprep.subr.bf16.mxu1 %v1245_v43 }
  0x4d   :  { %1016 = vmatpush3.bf16.msra.mxu0 %v1133_v48 }
  0x4e   :  { %1017 = vmatprep.subr.bf16.mxu0 %v1134_v49 }
  0x51   :  { %1018 = vmatpush3.bf16.msra.mxu0 %v1135_v50 }
  0x52   :  { %1019 = vmatprep.subr.bf16.mxu0 %v1136_v51  ;;  %1054 = vmatmul.mubr.msk.bf16.vlgmr.msra.gmra.mrb[4].mxu1 %vm476_vm1, %v76_v0 }
  0x53   :  { %1073 = vmatprep.mubr.msk.bf16.mxu1 %vm1246_vm0, %v1245_v43  ;;  %1058 = vmatpush3.bf16.msra.mxu1 %v1147_v7 }
  0x54   :  { %1059 = vmatprep.subr.bf16.mxu1 %v1245_v43 }
  0x55   :  { %1020 = vmatpush3.bf16.msra.mxu0 %v1137_v52  ;;  %v1157_v52 = vld [vmem:[%s1399_s5 + $0x10] sm:$0xff]  }
  0x56   :  { %1021 = vmatprep.subr.bf16.mxu0 %v1138_v53  ;;  %v1158_v53 = vld [vmem:[%s1399_s5 + $0x18] sm:$0xff]  }
  0x57   :  { %1060 = vmatpush3.bf16.msra.mxu1 %v1148_v8 }
  0x58   :  { %1061 = vmatprep.subr.bf16.mxu1 %v1245_v43 }
  0x59   :  { %1022 = vmatpush3.bf16.msra.mxu0 %v1139_v54  ;;  %v945_v54 = vld [vmem:[%s1398_s4] ss:$0 sm:$0xff]  ;;  %s1247_s4 = smov [#allocation7]  }
  0x5a   :  { %1023 = vmatprep.subr.bf16.mxu0 %v1140_v55  ;;  %s881_s5 = sshll.u32 %s1247_s4, 4  ;;  %s882_s5 = int_to_ptr.vmem [resolvable:$true] %s881_s5 }
  0x5b   :  { %1062 = vmatpush3.bf16.msra.mxu1 %v1149_v9  ;;  %p1216_p3 = scmp.lt.s32.totalorder %s882_s5, %s882_s5 }
  0x5c   :  { %1063 = vmatprep.subr.bf16.mxu1 %v1245_v43 }
  0x5d   :  { %1024 = vmatpush3.bf16.msra.mxu0 %v1141_v58 }
  0x5e   :  { %1025 = vmatprep.subr.bf16.mxu0 %v1142_v59 }
  0x5f   :  { %1064 = vmatpush3.bf16.msra.mxu1 %v1150_v10 }
  0x60   :  { %1065 = vmatprep.subr.bf16.mxu1 %v1245_v43 }
  0x61   :  { %1026 = vmatpush3.bf16.msra.mxu0 %v1143_v1 }
  0x62   :  { %1027 = vmatprep.subr.bf16.mxu0 %v1144_v2 }
  0x63   :  { %1066 = vmatpush3.bf16.msra.mxu1 %v1151_v11 }
  0x64   :  { %1067 = vmatprep.subr.bf16.mxu1 %v1245_v43 }
  0x65   :  { %1028 = vmatpush3.bf16.msra.mxu0 %v1145_v3 }
  0x66   :  { %1077 = vmatprep.subr.bf16.mxu0 %v1245_v43 }
  0x67   :  { %1068 = vmatpush3.bf16.msra.mxu1 %v1152_v12 }
  0x68   :  { %595 = vmatmul.mubr.bf16.vlgmr.msra.gmra.mrb[4].mxu0 %v74_v6  ;;  %1069 = vmatprep.subr.bf16.mxu1 %v1245_v43 }
  0x69   :  { %1085 = vmatprep.mubr.msk.bf16.mxu0 %vm1246_vm0, %v1245_v43  ;;  %1078 = vmatpush3.bf16.msra.mxu0 %v1155_v15 }
  0x6a   :  { %1079 = vmatprep.subr.bf16.mxu0 %v1245_v43 }
  0x6b   :  { %1070 = vmatpush3.bf16.msra.mxu1 %v1153_v13 }
  0x6c   :  { %1071 = vmatprep.subr.bf16.mxu1 %v1245_v43 }
  0x6d   :  { %1080 = vmatpush3.bf16.msra.mxu0 %v1156_v16 }
  0x6e   :  { %1081 = vmatprep.subr.bf16.mxu0 %v1245_v43 }
  0x6f   :  { %1072 = vmatpush3.bf16.msra.mxu1 %v1154_v14 }
  0x71   :  { %1082 = vmatpush3.bf16.msra.mxu0 %v1157_v52 }
  0x72   :  { %1083 = vmatprep.subr.bf16.mxu0 %v1245_v43  ;;  %v954_v43 = vld [vmem:[%s1400_s6] ss:$0 sm:$0xff]  ;;  %s1211_s6 = scalar_lea.vmem %s882_s5, 128 }
  0x73   :  { %p1212_p2 = scmp.ne.s32.totalorder %s882_s5, %s1211_s6  ;;  %p1217_p4 = scmp.lt.s32.totalorder %s1211_s6, %s1211_s6 }
  0x75   :  { %1084 = vmatpush3.bf16.msra.mxu0 %v1158_v53  ;;  %p1218_p5 = por %p1217_p4, %p1216_p3 }
  0x77   :  { %p1219_p6 = pnand %p1218_p5, %p1212_p2 }
 0x11b   :  { %v985_v17 = vpop.f32.mrb[0].mxu0 }
 0x11c   :  { %v986_v19 = vpop.f32.mrb[1].mxu0 }
 0x11d   :  { %v987_v20 = vadd.f32 %v986_v19, %v985_v17  ;;  %v988_v21 = vpop.f32.mrb[2].mxu0  ;;  %v1007_v22 = vpop.f32.mrb[0].mxu1 }
 0x11e   :  { %v989_v23 = vpop.f32.mrb[3].mxu0  ;;  %v1008_v26 = vpop.f32.mrb[1].mxu1 }
 0x11f   :  { %v515_v24 = vadd.f32 %v987_v20, %v894_v18  ;;  %v990_v25 = vadd.f32 %v989_v23, %v988_v21  ;;  %v1009_v27 = vadd.f32 %v1008_v26, %v1007_v22  ;;  %v1010_v28 = vpop.f32.mrb[2].mxu1 }
 0x120   :  { %v1011_v30 = vpop.f32.mrb[3].mxu1 }
 0x121   :  { %v518_v29 = vadd.f32 %v990_v25, %v894_v18  ;;  %v556_v31 = vadd.f32 %v1009_v27, %v515_v24  ;;  %v1012_v32 = vadd.f32 %v1011_v30, %v1010_v28 }
 0x123   :  { %v559_v33 = vadd.f32 %v1012_v32, %v518_v29 }
 0x125   :  { %v637_v34 = vpop.f32.mrb[4].mxu1 }
 0x126   :  { %v1055_v35 = vpop.f32.mrb[5].mxu1 }
 0x127   :  { %v640_v36 = vpop.f32.mrb[6].mxu1 }
 0x128   :  { %v1056_v37 = vpop.f32.mrb[7].mxu1 }
 0x13b   :  { %v1029_v38 = vpop.f32.mrb[4].mxu0 }
 0x13c   :  { %v1030_v39 = vpop.f32.mrb[5].mxu0 }
 0x13d   :  { %v1031_v40 = vadd.f32 %v1030_v39, %v1029_v38  ;;  %v1032_v41 = vpop.f32.mrb[6].mxu0 }
 0x13e   :  { %v1033_v42 = vpop.f32.mrb[7].mxu0 }
 0x13f   :  { %v597_v44 = vadd.f32 %v1031_v40, %v556_v31  ;;  %v1034_v45 = vadd.f32 %v1033_v42, %v1032_v41 }
 0x141   :  { %v638_v46 = vadd.f32 %v637_v34, %v597_v44  ;;  %v600_v47 = vadd.f32 %v1034_v45, %v559_v33 }
 0x143   :  { %v641_v48 = vadd.f32 %v640_v36, %v600_v47  ;;  %v644_v49 = vmax.f32 %v638_v46, 0.0 }
 0x145   :  { %v645_v50 = vmax.f32 %v641_v48, 0.0 }
 0x147   :  { %v646_v51 = vpack.c.bf16 %v645_v50, %v644_v49 }
 0x149   :  { %1074 = vmatmul.mubr.bf16.vlgmr.msra.gmra.mrb[8].mxu1 %v646_v51 }
 0x21c   :  { %v752_v55 = vpop.f32.mrb[8].mxu1 }
 0x21d   :  { %v753_v56 = vadd.f32 %v945_v54, %v752_v55  ;;  %v1075_v57 = vpop.f32.mrb[9].mxu1 }
 0x21e   :  { %v755_v58 = vpop.f32.mrb[10].mxu1 }
 0x21f   :  { %v756_v59 = vadd.f32 %v945_v54, %v755_v58  ;;  %v1076_v60 = vpop.f32.mrb[11].mxu1  ;;  %v759_v61 = vmax.f32 %v753_v56, 0.0 }
 0x221   :  { %v760_v62 = vmax.f32 %v756_v59, 0.0 }
 0x223   :  { %v761_v63 = vpack.c.bf16 %v760_v62, %v759_v61 }
 0x225   :  { %1086 = vmatmul.mubr.msk.bf16.vlgmr.msra.gmra.mrb[8].mxu0 %vm801_vm2, %v761_v63 }
 0x2f8   :  { %v839_v0 = vpop.f32.mrb[8].mxu0 }
 0x2f9   :  { %v840_v1 = vadd.f32 %v954_v43, %v839_v0  ;;  %v1087_v2 = vpop.f32.mrb[9].mxu0 }
 0x2fa   :  { %v842_v3 = vpop.f32.mrb[10].mxu0 }
 0x2fb   :  { %846 = vmax.xlane.f32.xlu0 %v840_v1  ;;  %v1088_v4 = vpop.f32.mrb[11].mxu0  ;;  %v843_v5 = vadd.f32 %v954_v43, %v842_v3 }
 0x2ff   :  { %848 = vmax.xlane.f32.xlu0 %v843_v5 }
 0x388   :  { %v847_v6 = vpop.xlane.xlu0 %846 }
 0x389   :  { %v850_v7 = vsub.f32 %v840_v1, %v847_v6 }
 0x38b   :  { %v852_v8 = vmul.f32 1.442695, %v850_v7 }
 0x38c   :  { %v849_v9 = vpop.xlane.xlu0 %848 }
 0x38d   :  { %v851_v10 = vsub.f32 %v843_v5, %v849_v9  ;;  %1159 = vpow2.f32 %v852_v8 }
 0x38f   :  { %v854_v11 = vmul.f32 1.442695, %v851_v10 }
 0x391   :  { %1161 = vpow2.f32 %v854_v11 }
 0x397   :  { %v1160_v12 = vpop.eup %1159 }
 0x398   :  { %856 = vadd.xlane.f32.xlu1 %v1160_v12 }
 0x39b   :  { %v1162_v13 = vpop.eup %1161 }
 0x39c   :  { %858 = vadd.xlane.f32.xlu1 %v1162_v13 }
 0x425   :  { %v857_v14 = vpop.xlane.xlu1 %856 }
 0x426   :  { %1163 = vlog2.f32 %v857_v14 }
 0x429   :  { %v859_v15 = vpop.xlane.xlu1 %858 }
 0x42a   :  { %1165 = vlog2.f32 %v859_v15 }
 0x430   :  { %v1164_v16 = vpop.eup %1163 }
 0x431   :  { %v861_v17 = vmul.f32 0.6931472, %v1164_v16 }
 0x433   :  { %v864_v20 = vsub.f32 %v850_v7, %v861_v17 }
 0x434   :  { %v1166_v18 = vpop.eup %1165 }
 0x435   :  { %v863_v19 = vmul.f32 0.6931472, %v1166_v18 }
 0x437   :  { %v865_v21 = vsub.f32 %v851_v10, %v863_v19 }
 0x439   :  { %v967_v22 = vpack.c.bf16 %v865_v21, %v864_v20 }
 0x43b   :  { %968 = vst [vmem:[#allocation7] sm:$0xff] %v967_v22  }
 0x43c   :  { %1222 = shalt.err (!%p1219_p6)
}
 0x43d   :  { %s1223_s11 = scalar_lea.hbm %s1401_s7, 128 }
 0x43e   :  { %p1224_p7 = scmp.ne.s32.totalorder %s1401_s7, %s1223_s11  ;;  %p1227_p8 = scmp.lt.u32.totalorder %s1223_s11, %s1401_s7 }
 0x440   :  { %p1229_p9 = pnand %p1227_p8, %p1224_p7 }
 0x442   :  { %1232 = shalt.err (!%p1229_p9)
}
 0x443   :  { %887 = dma.vmem_to_hbm [thread:$0]  %s882_s5, 128, %s1401_s7, [#allocation4], %s1243_s0, %s1243_s0, %s1244_s25  }
 0x444   :  { %1237 = dma.done.wait [#allocation4], 128  }
 0x445   :  { %1238 = vsyncadd [#allocation4], 4294967168 }
 0x446   :  { %891 = vsyncpa [#allocation3], 1 }
 0x447   :  { %892 = vsyncpa [#allocation6], 1 }
 0x448   :  { %893 = vsyncpa [#allocation4], 1 }

</bundles_post_ra>
